<compile_context>
chip_gen: v7x
topology: tpu7x:2x2x1
jax: 0.10.0
libtpu: 0.0.40
codegen_flags: <defaults>
</compile_context>

<pallas_src>
import functools

import numpy as np
import jax
import jax.numpy as jnp
from jax import lax
from jax.experimental import pallas as pl
from jax.experimental.pallas import tpu as pltpu


def _conf_kernel(logits_ref, labels_ref, conf_ref, *, ignore_index, hw, tile):
    """Accumulate one batch element's (C, C) confusion matrix over pixel tiles.

    logits_ref: (C, TILE) float  -- class scores, pixels on the lane axis
    labels_ref: (1, TILE) int32  -- true labels
    conf_ref:   (C, C)    int32  -- VMEM-resident per-batch accumulator
    """
    i = pl.program_id(1)

    @pl.when(i == 0)
    def _():
        conf_ref[...] = jnp.zeros_like(conf_ref)

    x = logits_ref[...]                       # (C, T)
    tgt = labels_ref[...]                     # (1, T) int32
    c, t = x.shape

    # ---- argmax over classes: unrolled compare/select chain (C is small).
    best = x[0:1, :]                          # (1, T)
    pred = jnp.zeros((1, t), jnp.int32)
    for k in range(1, c):
        row = x[k:k + 1, :]
        gt = row > best                       # strict > keeps the first max
        best = jnp.where(gt, row, best)
        pred = jnp.where(gt, jnp.int32(k), pred)

    cls = lax.broadcasted_iota(jnp.int32, (c, t), 0)           # sublane class id
    pred_oh = (cls == pred)                                    # (C, T)

    # ---- valid-pixel mask: label range, ignore_index, ragged tail.
    pix = lax.broadcasted_iota(jnp.int32, (1, t), 1)
    n_rem = hw - i * tile                                      # pixels left in row
    valid = (tgt >= 0) & (tgt < c) & (tgt != ignore_index) & (pix < n_rem)
    true_oh = (cls == tgt) & valid                             # (C, T)

    # ---- hist[t_cls, p_cls] += sum_pix true_oh * pred_oh  (MXU, bf16 in,
    # f32 accumulate; block counts <= TILE < 2^24 so the int32 cast is exact).
    delta = lax.dot_general(
        true_oh.astype(jnp.bfloat16), pred_oh.astype(jnp.bfloat16),
        dimension_numbers=(((1,), (1,)), ((), ())),
        preferred_element_type=jnp.float32)                    # (C, C)
    conf_ref[...] += delta.astype(jnp.int32)


def _dsc_from_conf(mat, eps, ignore_index):
    """Replicates DiceScoreCoefficient._dsc on the (C, C) confusion matrix."""
    mat = mat.astype(jnp.float32)
    tp = jnp.diag(mat)
    fp = mat.sum(axis=1)
    fn = mat.sum(axis=0)
    precision = tp / (fp + eps)
    recall = tp / (fn + eps)
    dsc = 2.0 * precision * recall / (precision + recall + eps)
    gt_empty = (tp + fn) == 0.0
    pred_empty = (tp + fp) == 0.0
    dsc = jnp.where(gt_empty & pred_empty, jnp.nan, dsc)
    dsc = jnp.where(gt_empty & (~pred_empty), 0.0, dsc)
    dsc = dsc.at[ignore_index].set(jnp.nan)
    return dsc


def _pick_tile(hw, n_classes, itemsize, vmem_budget_bytes=8 * 1024 * 1024):
    """Largest lane-dense pixel tile whose double-buffered logits block fits
    the budget (safe vs. v7x's smaller scoped VMEM), capped at 32K pixels."""
    t = vmem_budget_bytes // (2 * max(1, n_classes) * itemsize)
    t = max(128, min(32768, t))
    t = (t // 128) * 128
    hw_rounded = ((hw + 127) // 128) * 128
    return max(128, min(t, hw_rounded))


def dice_score_coefficient(output, target, *, n_classes, eps=1e-8,
                           ignore_index=0, tile_pixels=None):
    """output: (B, n_classes, *spatial) logits; target: (B, *spatial) int labels.

    Returns per-class Dice scores, shape (n_classes,), float32 (NaN for
    absent / ignored classes), matching the PyTorch module's forward on a
    freshly-zeroed confusion-matrix buffer.
    """
    B = output.shape[0]
    C = output.shape[1]
    assert C == n_classes
    hw = int(np.prod(output.shape[2:]))

    # Free reshapes only -- no transpose, no pad, no dtype upcast.
    logits = output.reshape(B, C, hw)
    labels = target.reshape(B, 1, hw).astype(jnp.int32)

    if tile_pixels is None:
        tile_pixels = _pick_tile(hw, C, jnp.dtype(logits.dtype).itemsize)
    tile_pixels = max(128, (tile_pixels // 128) * 128)
    n_tiles = pl.cdiv(hw, tile_pixels)

    partials = pl.pallas_call(
        functools.partial(_conf_kernel, ignore_index=ignore_index,
                          hw=hw, tile=tile_pixels),
        out_shape=jax.ShapeDtypeStruct((B, C, C), jnp.int32),
        grid=(B, n_tiles),
        in_specs=[
            pl.BlockSpec((None, C, tile_pixels), lambda b, i: (b, 0, i)),
            pl.BlockSpec((None, 1, tile_pixels), lambda b, i: (b, 0, i)),
        ],
        out_specs=pl.BlockSpec((None, C, C), lambda b, i: (b, 0, 0)),
        compiler_params=pltpu.CompilerParams(
            dimension_semantics=("parallel", "arbitrary"),
            vmem_limit_bytes=32 * 1024 * 1024),
    )(logits, labels)

    conf = partials.sum(axis=0)            # (C, C) int32, exact counts
    return _dsc_from_conf(conf, eps, ignore_index)


def _reference(output, target, *, n_classes, eps=1e-8, ignore_index=0):
    """Pure-JAX reference reproducing the PyTorch forward."""
    seg = jnp.argmax(output, axis=1).reshape(-1)
    lt = target.reshape(-1)
    mask = (lt >= 0) & (lt < n_classes) & (lt != ignore_index)
    combined = jnp.where(mask, lt * n_classes + seg, n_classes * n_classes)
    hist = jnp.bincount(combined, length=n_classes * n_classes + 1)
    mat = hist[: n_classes * n_classes].reshape(n_classes, n_classes)
    return _dsc_from_conf(mat.astype(jnp.float32), eps, ignore_index)


if __name__ == "__main__":
    B, C, H, W = 2, 4, 16, 16
    key = jax.random.PRNGKey(0)
    k_logits, k_labels = jax.random.split(key)
    output = jax.random.normal(k_logits, (B, C, H, W), dtype=jnp.float32)
    target = jax.random.randint(k_labels, (B, H, W), 0, C, dtype=jnp.int32)

    dsc = dice_score_coefficient(output, target, n_classes=C,
                                 eps=1e-8, ignore_index=0)
    dsc = jax.block_until_ready(dsc)

    ref = jax.block_until_ready(
        _reference(output, target, n_classes=C, eps=1e-8, ignore_index=0))

    np.testing.assert_allclose(np.asarray(dsc), np.asarray(ref),
                               rtol=1e-5, atol=1e-6)
    print("KERNEL_OK")
</pallas_src>

<mosaic_0001>
module attributes {stable_mosaic.version = 11 : i64} {
  func.func @_conf_kernel(%arg0: i32, %arg1: i32, %arg2: memref<1x4x256xf32, #tpu.memory_space<vmem>>, %arg3: memref<1x1x256xi32, #tpu.memory_space<vmem>>, %arg4: memref<1x4x4xi32, #tpu.memory_space<vmem>>) attributes {dimension_semantics = [#tpu.dimension_semantics<parallel>, #tpu.dimension_semantics<arbitrary>], iteration_bounds = array<i64: 2, 1>, scalar_prefetch = 0 : i64, scratch_operands = 0 : i64, tpu.core_type = #tpu.core_type<tc>, window_params = [{transform_indices = @transform_0, window_bounds = array<i64: 1, 4, 256>}, {transform_indices = @transform_1, window_bounds = array<i64: 1, 1, 256>}, {transform_indices = @transform_2, window_bounds = array<i64: 1, 4, 4>}]} {
    %c0_i32 = arith.constant 0 : i32
    %0 = arith.cmpi eq, %arg1, %c0_i32 : i32
    %1 = arith.extui %0 : i1 to i32
    %c0_i32_0 = arith.constant 0 : i32
    %2 = arith.cmpi ne, %1, %c0_i32_0 : i32
    scf.if %2 {
      %c0_i32_16 = arith.constant 0 : i32
      %58 = vector.broadcast %c0_i32_16 : i32 to vector<4x4xi32>
      %c0_17 = arith.constant 0 : index
      %c0_18 = arith.constant 0 : index
      %c0_19 = arith.constant 0 : index
      %59 = vector.load %arg4[%c0_17, %c0_18, %c0_19] : memref<1x4x4xi32, #tpu.memory_space<vmem>>, vector<1x4x4xi32>
      %60 = vector.shape_cast %59 : vector<1x4x4xi32> to vector<4x4xi32>
      %61 = vector.shape_cast %58 : vector<4x4xi32> to vector<1x4x4xi32>
      tpu.vector_store %arg4[%c0_17, %c0_18, %c0_19], %61 {strides = array<i32>} : memref<1x4x4xi32, #tpu.memory_space<vmem>>, vector<1x4x4xi32>,
    } else {
    }
    %c0 = arith.constant 0 : index
    %c0_1 = arith.constant 0 : index
    %c0_2 = arith.constant 0 : index
    %3 = vector.load %arg2[%c0, %c0_1, %c0_2] : memref<1x4x256xf32, #tpu.memory_space<vmem>>, vector<1x4x256xf32>
    %4 = vector.shape_cast %3 : vector<1x4x256xf32> to vector<4x256xf32>
    %c0_3 = arith.constant 0 : index
    %c0_4 = arith.constant 0 : index
    %c0_5 = arith.constant 0 : index
    %5 = vector.load %arg3[%c0_3, %c0_4, %c0_5] : memref<1x1x256xi32, #tpu.memory_space<vmem>>, vector<1x1x256xi32>
    %6 = vector.shape_cast %5 : vector<1x1x256xi32> to vector<1x256xi32>
    %7 = vector.extract_strided_slice %4 {offsets = [0, 0], sizes = [1, 256], strides = [1, 1]} : vector<4x256xf32> to vector<1x256xf32>
    %c0_i32_6 = arith.constant 0 : i32
    %8 = vector.broadcast %c0_i32_6 : i32 to vector<1x256xi32>
    %9 = vector.extract_strided_slice %4 {offsets = [1, 0], sizes = [1, 256], strides = [1, 1]} : vector<4x256xf32> to vector<1x256xf32>
    %10 = arith.cmpf ogt, %9, %7 : vector<1x256xf32>
    %11 = arith.select %10, %9, %7 : vector<1x256xi1>, vector<1x256xf32>
    %c1_i32 = arith.constant 1 : i32
    %12 = vector.broadcast %c1_i32 : i32 to vector<1x256xi32>
    %13 = arith.select %10, %12, %8 : vector<1x256xi1>, vector<1x256xi32>
    %14 = vector.extract_strided_slice %4 {offsets = [2, 0], sizes = [1, 256], strides = [1, 1]} : vector<4x256xf32> to vector<1x256xf32>
    %15 = arith.cmpf ogt, %14, %11 : vector<1x256xf32>
    %16 = arith.select %15, %14, %11 : vector<1x256xi1>, vector<1x256xf32>
    %c2_i32 = arith.constant 2 : i32
    %17 = vector.broadcast %c2_i32 : i32 to vector<1x256xi32>
    %18 = arith.select %15, %17, %13 : vector<1x256xi1>, vector<1x256xi32>
    %19 = vector.extract_strided_slice %4 {offsets = [3, 0], sizes = [1, 256], strides = [1, 1]} : vector<4x256xf32> to vector<1x256xf32>
    %20 = arith.cmpf ogt, %19, %16 : vector<1x256xf32>
    %c3_i32 = arith.constant 3 : i32
    %21 = vector.broadcast %c3_i32 : i32 to vector<1x256xi32>
    %22 = arith.select %20, %21, %18 : vector<1x256xi1>, vector<1x256xi32>
    %23 = tpu.iota {dimensions = array<i32: 0>} : vector<4x256xi32>
    %24 = vector.broadcast %22 : vector<1x256xi32> to vector<4x256xi32>
    %25 = arith.cmpi eq, %23, %24 : vector<4x256xi32>
    %26 = tpu.iota {dimensions = array<i32: 1>} : vector<1x256xi32>
    %c256_i32 = arith.constant 256 : i32
    %27 = arith.muli %arg1, %c256_i32 : i32
    %c256_i32_7 = arith.constant 256 : i32
    %28 = arith.subi %c256_i32_7, %27 : i32
    %c0_i32_8 = arith.constant 0 : i32
    %29 = vector.broadcast %c0_i32_8 : i32 to vector<1x256xi32>
    %30 = arith.cmpi sge, %6, %29 : vector<1x256xi32>
    %c4_i32 = arith.constant 4 : i32
    %31 = vector.broadcast %c4_i32 : i32 to vector<1x256xi32>
    %32 = arith.cmpi slt, %6, %31 : vector<1x256xi32>
    %33 = arith.andi %30, %32 : vector<1x256xi1>
    %c0_i32_9 = arith.constant 0 : i32
    %34 = vector.broadcast %c0_i32_9 : i32 to vector<1x256xi32>
    %35 = arith.cmpi ne, %6, %34 : vector<1x256xi32>
    %36 = arith.andi %33, %35 : vector<1x256xi1>
    %37 = vector.broadcast %28 : i32 to vector<1x256xi32>
    %38 = arith.cmpi slt, %26, %37 : vector<1x256xi32>
    %39 = arith.andi %36, %38 : vector<1x256xi1>
    %40 = vector.broadcast %6 : vector<1x256xi32> to vector<4x256xi32>
    %41 = arith.cmpi eq, %23, %40 : vector<4x256xi32>
    %42 = vector.broadcast %39 : vector<1x256xi1> to vector<4x256xi1>
    %43 = arith.andi %41, %42 : vector<4x256xi1>
    %44 = arith.extui %43 : vector<4x256xi1> to vector<4x256xi32>
    %45 = arith.sitofp %44 : vector<4x256xi32> to vector<4x256xf32>
    %46 = arith.truncf %45 : vector<4x256xf32> to vector<4x256xbf16>
    %47 = arith.extui %25 : vector<4x256xi1> to vector<4x256xi32>
    %48 = arith.sitofp %47 : vector<4x256xi32> to vector<4x256xf32>
    %49 = arith.truncf %48 : vector<4x256xf32> to vector<4x256xbf16>
    %cst = arith.constant dense<0.000000e+00> : vector<4x4xf32>
    %50 = tpu.matmul %46, %49, %cst {dimension_numbers = #tpu.dot_dimension_numbers<[1], [1], [0], [0], [0, 0, 1, 0], [], []>} : vector<4x256xbf16>, vector<4x256xbf16>, vector<4x4xf32> -> vector<4x4xf32>
    %c0_10 = arith.constant 0 : index
    %c0_11 = arith.constant 0 : index
    %c0_12 = arith.constant 0 : index
    %51 = vector.load %arg4[%c0_10, %c0_11, %c0_12] : memref<1x4x4xi32, #tpu.memory_space<vmem>>, vector<1x4x4xi32>
    %52 = vector.shape_cast %51 : vector<1x4x4xi32> to vector<4x4xi32>
    %53 = arith.fptosi %50 : vector<4x4xf32> to vector<4x4xi32>
    %54 = arith.addi %52, %53 : vector<4x4xi32>
    %c0_13 = arith.constant 0 : index
    %c0_14 = arith.constant 0 : index
    %c0_15 = arith.constant 0 : index
    %55 = vector.load %arg4[%c0_13, %c0_14, %c0_15] : memref<1x4x4xi32, #tpu.memory_space<vmem>>, vector<1x4x4xi32>
    %56 = vector.shape_cast %55 : vector<1x4x4xi32> to vector<4x4xi32>
    %57 = vector.shape_cast %54 : vector<4x4xi32> to vector<1x4x4xi32>
    tpu.vector_store %arg4[%c0_13, %c0_14, %c0_15], %57 {strides = array<i32>} : memref<1x4x4xi32, #tpu.memory_space<vmem>>, vector<1x4x4xi32>,
    return
  }
  func.func @transform_0(%arg0: i32, %arg1: i32) -> (i32, i32, i32) {
    %c0_i32 = arith.constant 0 : i32
    %c0_i32_0 = arith.constant 0 : i32
    return %arg0, %c0_i32, %arg1 : i32, i32, i32
  }
  func.func @transform_1(%arg0: i32, %arg1: i32) -> (i32, i32, i32) {
    %c0_i32 = arith.constant 0 : i32
    %c0_i32_0 = arith.constant 0 : i32
    return %arg0, %c0_i32, %arg1 : i32, i32, i32
  }
  func.func @transform_2(%arg0: i32, %arg1: i32) -> (i32, i32, i32) {
    %c0_i32 = arith.constant 0 : i32
    %c0_i32_0 = arith.constant 0 : i32
    %c0_i32_1 = arith.constant 0 : i32
    return %arg0, %c0_i32, %c0_i32_0 : i32, i32, i32
  }
}

</mosaic_0001>

<bundles_post_ra>
// kernel: tpu_custom_call.1
= control target key start
LH: loop header
LB: loop body
LE: loop exit
PB: predicated region body
PF: predicated region fallthrough
CT: control target
= control target key end

     0   :  { %7 = vsyncpa [#allocation3], 0  ;;  %s1000_s0 = inlined_call_operand.hbm [shape: f32[2,4,256], index: 0, kind: input, shape index: {}]   ;;  %s1001_s1 = inlined_call_operand.hbm [shape: s32[2,1,256], index: 1, kind: input, shape index: {}]   ;;  %s1002_s2 = inlined_call_operand.hbm [shape: s32[2,4,4], index: 2, kind: output, shape index: {}]  }
   0x1   :  { %9 = vsyncpa [#allocation3 + $0x1], 0 }
   0x2   :  { %10 = vsyncpa [#allocation6], 0 }
   0x3   :  { %12 = vsyncpa [#allocation6 + $0x1], 0 }
   0x4   :  { %13 = vsyncpa [#allocation4], 0 }
   0x5   :  { %15 = vsyncpa [#allocation4 + $0x1], 0  ;;  %s776_s9 = smov 0   ;;  %s778_s10 = smov 0  }
   0x6   :  { %s780_s11 = smov 0   ;;  %s782_s12 = smov 0  }
   0x7   :  { %s784_s13 = smov 0   ;;  %s786_s14 = smov 0  }
   0x8 LB: > { %s501_s15 = sadd.s32 4294967295, %s752_s14   ;;  %s502_s16 = sadd.s32 4294967294, %s752_s14   ;;  %s752_s14 = sphi %s786_s14, %s21_s14   ;;  %s748_s13 = sphi %s784_s13, %s1022_s13   ;;  %s744_s12 = sphi %s782_s12, %s1021_s12   ;;  %s740_s11 = sphi %s780_s11, %s1020_s11   ;;  %s736_s10 = sphi %s778_s10, %s1019_s10   ;;  %s732_s9 = sphi %s776_s9, %s1018_s9  }
   0x9   : > { %s33_s17 = sadd.s32 1, %s748_s13  ;;  %s42_s18 = sadd.s32 1, %s740_s11 }
   0xa   : > { %p35_p0 = scmp.ge.s32.totalorder %s33_s17, 2  ;;  %p49_p1 = scmp.ne.s32.totalorder %s740_s11, %s736_s10 }
   0xb   : > { %p50_p2 = scmp.eq.s32.totalorder %s752_s14, 0  ;;  %p55_p3 = scmp.ne.s32.totalorder %s736_s10, %s732_s9 }
   0xc   : > { %s1024_s17 = smov (%p35_p0, %s33_s17), 0  ;;  %p56_p5 = scmp.eq.s32.totalorder %s501_s15, 0 }
   0xd   : > { %p817_p4 = por %p50_p2, %p49_p1  ;;  %s37_s20 = ssub.s32 %s748_s13, %s1024_s17 }
   0xe   : > { %p107_p6 = scmp.eq.s32.totalorder %s501_s15, 1  ;;  %p40_p7 = scmp.eq.s32.totalorder %s37_s20, 0 }
   0xf   : > { %p823_p8 = por %p56_p5, %p55_p3  ;;  %p113_p10 = scmp.eq.s32.totalorder %s502_s16, 1 }
  0x10   : > { %p827_p9 = por %p107_p6, %p49_p1  ;;  %p552_p13 = scmp.lt.s32.totalorder %s752_s14, 2 }
  0x11   : > { %s1006_s21 = scalar_select %p823_p8, 1, 0 }
  0x12   : > { %s1007_s22 = scalar_select %p827_p9, 1, 0 }
  0x13   : > { %s832_s23 = scalar_select %p40_p7, %s740_s11, %s42_s18  }
  0x14   : > { %p834_p11 = por %p113_p10, %p55_p3  ;;  %s841_s25 = sand.u32 1, %s740_s11  }
  0x15   : > { %s505_s26 = sshll.u32 %s841_s25, 3  ;;  %s531_s27 = sshll.u32 %s748_s13, 7 }
  0x16   : > { %s1008_s24 = scalar_select %p834_p11, 1, 0 }
  0x17   : > { %s848_s30 = scalar_lea.hbm %s1000_s0, %s531_s27  ;;  %s137_s3 = scalar_lea.vmem [#allocation2], %s505_s26 }
  0x18   : > { %s147_s4 = sshll.u32 %s137_s3, 4  ;;  %p854_p0 = pnand %p552_p13, %p817_p4  ;;  %s850_s4 = int_to_ptr.vmem [resolvable:$true] %s147_s4 }
  0x19   : > { %s134_s6 = scalar_lea.sflag [#allocation3], %s841_s25  ;;  %s606_s7 = scalar_lea.hbm %s848_s30, 128 }
  0x1a   : > { %p607_p3 = scmp.ne.s32.totalorder %s848_s30, %s606_s7  ;;  %p608_p5 = pneg %p854_p0 }
  0x1b   : > { %s611_s16 = scalar_lea.hbm %s1000_s0, 256  ;;  %p612_p4 = scmp.lt.u32.totalorder %s848_s30, %s1000_s0 }
  0x1c   : > { %p609_p6 = pnand %p608_p5, %p607_p3  ;;  %p613_p10 = scmp.lt.u32.totalorder %s611_s16, %s606_s7 }
  0x1d   : > { %p615_p12 = scmp.lt.u32.totalorder %s606_s7, %s848_s30 }
  0x1e   : > { %p610_p7 = pneg %p609_p6  ;;  %p614_p13 = por %p613_p10, %p612_p4 }
  0x20   : > { %p616_p1 = por %p615_p12, %p614_p13 }
  0x22   : > { %p617_p2 = pnand %p616_p1, %p610_p7 }
  0x24   : > { %620 = shalt.err (!%p617_p2)
}
  0x25   : > { %s621_s20 = scalar_lea.vmem %s850_s4, 128  ;;  %s754_s26 = smov [#allocation2]  }
  0x26   : > { %p622_p3 = scmp.ne.s32.totalorder %s850_s4, %s621_s20  ;;  %s626_s27 = sshll.u32 %s754_s26, 4  ;;  %s627_s27 = int_to_ptr.vmem [resolvable:$false] %s626_s27 }
  0x27   : > { %s628_s28 = scalar_lea.vmem %s627_s27, 256  ;;  %p629_p9 = scmp.lt.s32.totalorder %s850_s4, %s627_s27 }
  0x28   : > { %p624_p6 = pnand %p622_p3, %p608_p5  ;;  %p630_p4 = scmp.lt.s32.totalorder %s628_s28, %s621_s20 }
  0x2a   : > { %p625_p11 = pneg %p624_p6  ;;  %p631_p10 = por %p630_p4, %p629_p9 }
  0x2c   : > { %p632_p12 = pnand %p631_p10, %p625_p11 }
  0x2e   : > { %635 = shalt.err (!%p632_p12)
}
  0x2f   : > { %544 = dma.hbm_to_vmem [thread:$0]  (!%p854_p0), %s848_s30, 128, %s850_s4, %s134_s6  }
  0x30   : > { %p1010_p1 = scmp.lt.s32.totalorder %s752_s14, 3  ;;  %p1011_p2 = scmp.ge.s32.totalorder %s752_s14, 1 }
  0x31   : > { %s508_s3 = sshll.u32 %s841_s25, 1  ;;  %s532_s7 = sshll.u32 %s748_s13, 5 }
  0x32   : > { %p890_p7 = pnand %p1011_p2, %p1010_p1  ;;  %s899_s16 = scalar_lea.hbm %s1001_s1, %s532_s7 }
  0x33   : > { %s158_s18 = scalar_lea.vmem [#allocation5], %s508_s3  ;;  %s155_s30 = scalar_lea.sflag [#allocation6], %s841_s25 }
  0x34   : > { %s1012_s29 = scalar_select %p890_p7, 1, 0 }
  0x35   : > { %s168_s19 = sshll.u32 %s158_s18, 4  ;;  %s636_s4 = scalar_lea.hbm %s899_s16, 32  ;;  %s169_s19 = int_to_ptr.vmem [resolvable:$true] %s168_s19 }
  0x36   : > { %p637_p9 = scmp.ne.s32.totalorder %s899_s16, %s636_s4  ;;  %s641_s26 = scalar_lea.hbm %s1001_s1, 64 }
  0x37   : > { %p642_p3 = scmp.lt.u32.totalorder %s899_s16, %s1001_s1  ;;  %p643_p6 = scmp.lt.u32.totalorder %s641_s26, %s636_s4 }
  0x38   : > { %p639_p11 = pnand %p637_p9, %p608_p5  ;;  %p645_p10 = scmp.lt.u32.totalorder %s636_s4, %s899_s16 }
  0x39   : > { %p644_p4 = por %p643_p6, %p642_p3 }
  0x3a   : > { %p640_p13 = pneg %p639_p11 }
  0x3b   : > { %p646_p12 = por %p645_p10, %p644_p4 }
  0x3d   : > { %p647_p1 = pnand %p646_p12, %p640_p13 }
  0x3f   : > { %650 = shalt.err (!%p647_p1)
}
  0x40   : > { %s651_s25 = scalar_lea.vmem %s169_s19, 32  ;;  %s755_s3 = smov [#allocation5]  }
  0x41   : > { %p652_p2 = scmp.ne.s32.totalorder %s169_s19, %s651_s25  ;;  %s656_s7 = sshll.u32 %s755_s3, 4  ;;  %s657_s7 = int_to_ptr.vmem [resolvable:$false] %s656_s7 }
  0x42   : > { %s658_s8 = scalar_lea.vmem %s657_s7, 64  ;;  %p659_p8 = scmp.lt.s32.totalorder %s169_s19, %s657_s7 }
  0x43   : > { %p654_p9 = pnand %p652_p2, %p608_p5  ;;  %p660_p7 = scmp.lt.s32.totalorder %s658_s8, %s651_s25 }
  0x45   : > { %p655_p11 = pneg %p654_p9  ;;  %p661_p3 = por %p660_p7, %p659_p8 }
  0x47   : > { %p662_p6 = pnand %p661_p3, %p655_p11 }
  0x49   : > { %665 = shalt.err (!%p662_p6)
}
  0x4a   : > { %547 = dma.hbm_to_vmem [thread:$0]  (!%p854_p0), %s899_s16, 32, %s169_s19, %s155_s30  }
  0x4b   : > { %p1013_p13 = scmp.ne.s32.totalorder %s1012_s29, 0 }
  0x4c   : > { %s924_s15 = sand.u32 (!%p1013_p13), 1, %s736_s10   ;;  %p1014_p5 = scmp.ne.s32.totalorder (!%p1013_p13), %s1006_s21, 0 }
  0x4d   : > { %177 = sbr.rel (%p1013_p13) target bundleno = 348 (0x15c), region = 28  ;;  %s512_s18 = sshll.u32 (!%p1013_p13), %s924_s15, 3 }
  0x4e   : > { %s180_s4 = scalar_lea.sflag (!%p1013_p13), [#allocation3], %s924_s15  ;;  %s183_s6 = scalar_lea.vmem (!%p1013_p13), [#allocation2], %s512_s18 }
  0x54   : > { %719 = dma.done.wait (%p1014_p5), %s180_s4, 128  }
  0x55   : > { %721 = vsyncadd (%p1014_p5), %s180_s4, 4294967168  ;;  %s513_s5 = sshll.u32 %s924_s15, 1  ;;  %s189_s29 = scalar_lea.sflag [#allocation6], %s924_s15 }
  0x56   : > { %s192_s16 = scalar_lea.vmem [#allocation5], %s513_s5 }
  0x57   : > { %723 = dma.done.wait (%p1014_p5), %s189_s29, 32  }
  0x58   : > { %725 = vsyncadd (%p1014_p5), %s189_s29, 4294967264  ;;  %v248_v0 = vlaneseq  ;;  %s514_s19 = sshll.u32 %s924_s15, 2  ;;  %vm225_vm0 = vcmask 27648   ;;  %v756_v2 = vmov 1966171168   ;;  %v757_v4 = vmov 0  }
  0x59   : > { %v285_v3 = vunpack.c.l.s4 %v756_v2  ;;  %s939_s30 = scalar_lea.vmem [#allocation7], %s514_s19  ;;  %v758_v6 = vmov 1   ;;  %v227_v9 = vld [vmem:[%s183_s6] sm:$0xff]  ;;  %v228_v10 = vld [vmem:[%s192_s16] sm:$0x3]  ;;  %s528_s21 = sshll.u32 %s744_s12, 6 }
  0x5a   : > { %v249_v1 = vshrl.u32 %v248_v0, 7  ;;  %226 = vst.msk [vmem:[%s939_s30] sm:$0xf] %vm225_vm0, %v757_v4  ;;  %v283_v7 = vcombine.low %v758_v6, %v758_v6  ;;  %v230_v12 = vrot.slane %v227_v9, 7  ;;  %vm273_vm1 = vcmp.ge.s32.totalorder %v228_v10, 0  ;;  %s394_s20 = sshll.u32 %s939_s30, 4  ;;  %s949_s28 = scalar_lea.hbm %s1002_s2, %s528_s21  ;;  %s951_s20 = int_to_ptr.vmem [resolvable:$true] %s394_s20 }
  0x5b   : > { %v286_v5 = vunpack.c.0.s8 %v285_v3  ;;  %vm274_vm2 = vcmp.lt.s32.totalorder %v228_v10, 4  ;;  %vm276_vm3 = vcmp.ne.s32.totalorder %v228_v10, 0  ;;  %v759_v33 = vmov 1.0|1.0   ;;  %s381_s25 = scalar_lea.sflag [#allocation4], %s924_s15  ;;  %s666_s3 = scalar_lea.vmem %s951_s20, 64 }
  0x5c   : > { %v306_v11 = vsub.s32 1, %v249_v1  ;;  %vm275_vm4 = vmand %vm273_vm1, %vm274_vm2  ;;  %vm232_vm5 = vcmp.gt.f32.partialorder %v227_v9, %v230_v12  ;;  %v252_v20 = vsub.s32 3, %v249_v1  ;;  %v256_v23 = vsub.s32 7, %v249_v1  ;;  %p667_p8 = scmp.ne.s32.totalorder %s951_s20, %s666_s3  ;;  %p1015_p0 = scmp.ne.s32.totalorder %s1007_s22, 0 }
  0x5d   : > { %v289_v8 = vsub.s32 %v286_v5, %v249_v1  ;;  %v233_v14 = vsel %vm232_vm5, %v227_v9, %v230_v12  ;;  %v234_v15 = vsel %vm232_vm5, 1, %v757_v4  ;;  %vm277_vm6 = vmand %vm275_vm4, %vm276_vm3  ;;  %v302_v28 = vsub.s32 0, %v249_v1  ;;  %s760_s12 = smov [#allocation7]  }
  0x5e   : > { %v236_v17 = vrot.slane %v233_v14, 7  ;;  %v240_v18 = vrot.slane %v234_v15, 7  ;;  %v307_v19 = vrot.slane %v228_v10, %v306_v11  ;;  %p668_p7 = pnand %p667_p8, %p1015_p0  ;;  %s670_s7 = sshll.u32 %s760_s12, 4  ;;  %s671_s7 = int_to_ptr.vmem [resolvable:$false] %s670_s7 }
  0x5f   : > { %v290_v13 = vrot.slane %v283_v7, %v289_v8  ;;  %v303_v34 = vrot.slane %v228_v10, %v302_v28  ;;  %s672_s8 = scalar_lea.vmem %s671_s7, 128  ;;  %p673_p10 = scmp.lt.s32.totalorder %s951_s20, %s671_s7 }
  0x60   : > { %vm238_vm8 = vcmp.gt.f32.partialorder %v227_v9, %v236_v17  ;;  %vm309_vm10 = vcmp.eq.s32.totalorder %v249_v1, %v307_v19  ;;  %p669_p4 = pneg %p668_p7  ;;  %p674_p12 = scmp.lt.s32.totalorder %s672_s8, %s666_s3 }
  0x61   : > { %v297_v16 = vrot.slane %v290_v13, %v289_v8  ;;  %v239_v21 = vsel %vm238_vm8, %v227_v9, %v236_v17  ;;  %v241_v22 = vsel %vm238_vm8, 2, %v240_v18  ;;  %vm308_vm3 = vcmp.eq.s32.totalorder %v249_v1, %v303_v34  ;;  %v375_v40 = vld [vmem:[%s939_s30] sm:$0xf] }
  0x62   : > { %v243_v25 = vrot.slane %v239_v21, 7  ;;  %v246_v26 = vrot.slane %v241_v22, 7  ;;  %p675_p1 = por %p674_p12, %p673_p10 }
  0x63   : > { %vm298_vm7 = vcmp.ne.s32.totalorder %v297_v16, 0 }
  0x64   : > { %vm299_vm9 = vmand %vm277_vm6, %vm298_vm7  ;;  %vm245_vm11 = vcmp.gt.f32.partialorder %v227_v9, %v243_v25  ;;  %p676_p2 = pnand %p675_p1, %p669_p4 }
  0x65   : > { %v310_v24 = vsel %vm299_vm9, 1, %v757_v4  ;;  %v247_v29 = vsel %vm245_vm11, 3, %v246_v26 }
  0x66   : > { %v318_v27 = vrot.slane %v310_v24, %v306_v11  ;;  %v257_v30 = vrot.slane %v247_v29, %v256_v23  ;;  %v253_v31 = vrot.slane %v247_v29, %v252_v20  ;;  %v314_v32 = vrot.slane %v310_v24, %v302_v28 }
  0x68   : > { %vm320_vm12 = vcmp.eq.s32.totalorder %v318_v27, 1  ;;  %v265_v35 = vrot.slane %v257_v30, %v252_v20  ;;  %v261_v36 = vrot.slane %v253_v31, %v252_v20  ;;  %vm319_vm4 = vcmp.eq.s32.totalorder %v314_v32, 1 }
  0x69   : > { %vm322_vm13 = vmand %vm309_vm10, %vm320_vm12 }
  0x6a   : > { %vm523_vm14 = vmpackc.low %vm322_vm13, %vm322_vm13  ;;  %vm267_vm15 = vcmp.eq.s32.totalorder %v249_v1, %v265_v35  ;;  %vm266_vm1 = vcmp.eq.s32.totalorder %v249_v1, %v261_v36 }
  0x6b   : > { %524 = vmatprep.mubr.msk.bf16.mxu0 %vm523_vm14, %v759_v33  ;;  %vm519_vm2 = vmpackc.low %vm267_vm15, %vm267_vm15 }
  0x6c   : > { %520 = vmatprep.subr.msk.bf16.mxu0 %vm519_vm2, %v759_v33  ;;  %vm521_vm5 = vmpackc.low %vm266_vm1, %vm266_vm1 }
  0x6d   : > { %522 = vmatpush1.bf16.xpose.msk.msra.mxu0 %vm521_vm5, %v759_v33  ;;  %vm321_vm6 = vmand %vm308_vm3, %vm319_vm4 }
  0x6e   : > { %vm525_vm7 = vmpackc.low %vm321_vm6, %vm321_vm6 }
  0x74   : > { %526 = vmatmul.mubr.msk.bf16.vlgmr.msra.gmra.mrb[0].mxu0 %vm525_vm7, %v759_v33 }
 0x147   : > { %v369_v37 = vpop.f32.mrb[0].mxu0 }
 0x148   : > { %v533_v38 = vtrunc.f32 %v369_v37  ;;  %v371_v39 = vpop.f32.mrb[1].mxu0 }
 0x149   : > { %v372_v41 = vpop.f32.mrb[2].mxu0 }
 0x14a   : > { %v534_v42 = vcvt.f32.s32 %v533_v38  ;;  %v373_v43 = vpop.f32.mrb[3].mxu0 }
 0x14c   : > { %v377_v44 = vadd.s32 %v534_v42, %v375_v40 }
 0x14e   : > { %379 = vst.msk [vmem:[%s939_s30] sm:$0xf] %vm225_vm0, %v377_v44 }
 0x14f   : > { %679 = shalt.err (!%p676_p2)
}
 0x150   : > { %s680_s15 = scalar_lea.hbm %s949_s28, 64  ;;  %s684_s6 = scalar_lea.hbm %s1002_s2, 128 }
 0x151   : > { %p681_p9 = scmp.ne.s32.totalorder %s949_s28, %s680_s15  ;;  %p685_p6 = scmp.lt.u32.totalorder %s949_s28, %s1002_s2 }
 0x152   : > { %p686_p13 = scmp.lt.u32.totalorder %s684_s6, %s680_s15  ;;  %p688_p8 = scmp.lt.u32.totalorder %s680_s15, %s949_s28 }
 0x153   : > { %p682_p11 = pnand %p681_p9, %p1015_p0 }
 0x154   : > { %p687_p5 = por %p686_p13, %p685_p6 }
 0x155   : > { %p683_p3 = pneg %p682_p11 }
 0x156   : > { %p689_p7 = por %p688_p8, %p687_p5 }
 0x158   : > { %p690_p4 = pnand %p689_p7, %p683_p3 }
 0x15a   : > { %693 = shalt.err (!%p690_p4)
}
 0x15b   : > { %539 = dma.vmem_to_hbm [thread:$0]  (%p1015_p0), %s951_s20, 64, %s949_s28, %s381_s25  }
 0x15c PF: > { %s406_s16 = sand.u32 1, %s732_s9   ;;  %p1016_p10 = scmp.ne.s32.totalorder %s1008_s24, 0 }
 0x15d   : > { %p1017_p12 = scmp.ge.s32.totalorder %s752_s14, 2  ;;  %s407_s19 = scalar_lea.sflag [#allocation4], %s406_s16 }
 0x15f   : > { %p549_p1 = pnand %p1017_p12, %p1016_p10 }
 0x161   : > { %727 = dma.done.wait (!%p549_p1), %s407_s19, 64  }
 0x162   : > { %729 = vsyncadd (!%p549_p1), %s407_s19, 4294967232  ;;  %s21_s14 = sadd.s32 1, %s752_s14   ;;  %s1018_s9 = smov %s736_s10 }
 0x163   : > { %p18_p2 = scmp.ge.s32.totalorder %s21_s14, 4   ;;  %s1019_s10 = smov %s740_s11 }
 0x164   : > { %s1020_s11 = smov %s832_s23  ;;  %s1021_s12 = smov %s748_s13 }
 0x165   : > { %s1022_s13 = smov %s1024_s17  ;;  %20 = sbr.rel (!%p18_p2) target bundleno = 8 (0x8), region = 90 }
 0x16c   :  { %412 = vsyncpa [#allocation3], 1 }
 0x16d   :  { %414 = vsyncpa [#allocation3 + $0x1], 1 }
 0x16e   :  { %415 = vsyncpa [#allocation6], 1 }
 0x16f   :  { %417 = vsyncpa [#allocation6 + $0x1], 1 }
 0x170   :  { %418 = vsyncpa [#allocation4], 1 }
 0x171   :  { %420 = vsyncpa [#allocation4 + $0x1], 1 }

</bundles_post_ra>
